<compile_context>
chip_gen: v7x
topology: tpu7x:2x2x1
jax: 0.10.0
libtpu: 0.0.40
codegen_flags: <defaults>
</compile_context>

<pallas_src>
import jax
import jax.numpy as jnp
from jax.experimental import pallas as pl
from jax.experimental.pallas import tpu as pltpu

LANE = 128
VMEM_LIMIT = 32 * 1024 * 1024  # safe on v5e/v6e (128 MiB) and v7x (64 MiB)


def _round_up(x, m):
    return ((x + m - 1) // m) * m


def _pad2(a, rows, cols):
    r, c = a.shape
    return jnp.pad(a, ((0, rows - r), (0, cols - c)))


def _pick_tile(n, max_tile):
    """Largest multiple-of-8 divisor of n that is <= max_tile (n if none)."""
    best = None
    for t in range(8, min(n, max_tile) + 1, 8):
        if n % t == 0:
            best = t
    return best if best is not None else n


# ----------------------------------------------------------------------------
# Kernel A: image encoder  (conv + ReLU + global-avg-pool + img_mlc head)
#   grid = (B, n_hw_tiles), pooled feature accumulated in a VMEM scratch.
# ----------------------------------------------------------------------------
def encoder_forward(patches, pp, hw, max_row_tile=512):
    B, HWp, Kp = patches.shape
    Dp = pp["w_conv"].shape[1]
    Tp = pp["w_mlc"].shape[1]
    tile_hw = _pick_tile(HWp, max_row_tile)
    n_hw = HWp // tile_hw if HWp % tile_hw == 0 else 1
    if HWp % tile_hw != 0:
        tile_hw = HWp
    inv_hw = 1.0 / float(hw)
    f32, bf16 = jnp.float32, jnp.bfloat16

    def kernel(p_ref, wc_ref, bc_ref, wm_ref, bm_ref, feat_ref, mlc_ref, acc_ref):
        t = pl.program_id(1)

        @pl.when(t == 0)
        def _():
            acc_ref[...] = jnp.zeros_like(acc_ref)

        # 3x3 conv as im2col matmul (bf16 x bf16, f32 acc) + ReLU
        h = jnp.dot(p_ref[0], wc_ref[...], preferred_element_type=f32)
        h = jnp.maximum(h + bc_ref[...], 0.0)                     # (tile_hw, Dp)
        # partial global-avg-pool: sum rows of this HW tile (XLU, free vs MXU)
        acc_ref[...] += jnp.sum(h, axis=0, keepdims=True)         # (1, Dp)

        @pl.when(t == pl.num_programs(1) - 1)
        def _():
            feat = acc_ref[...] * inv_hw                          # (1, Dp) f32
            feat_ref[0] = feat.astype(feat_ref.dtype)
            mlc_ref[0] = (jnp.dot(feat.astype(bf16), wm_ref[...],
                                  preferred_element_type=f32) + bm_ref[...])

    return pl.pallas_call(
        kernel,
        out_shape=(jax.ShapeDtypeStruct((B, 1, Dp), bf16),   # feat (bf16 for reuse)
                   jax.ShapeDtypeStruct((B, 1, Tp), f32)),   # img_mlc
        grid_spec=pltpu.PrefetchScalarGridSpec(
            num_scalar_prefetch=0,
            grid=(B, n_hw),
            in_specs=[
                pl.BlockSpec((1, tile_hw, Kp), lambda b, t: (b, t, 0)),
                pl.BlockSpec((Kp, Dp), lambda b, t: (0, 0)),   # resident weight
                pl.BlockSpec((1, Dp), lambda b, t: (0, 0)),
                pl.BlockSpec((Dp, Tp), lambda b, t: (0, 0)),
                pl.BlockSpec((1, Tp), lambda b, t: (0, 0)),
            ],
            out_specs=[
                pl.BlockSpec((1, 1, Dp), lambda b, t: (b, 0, 0)),
                pl.BlockSpec((1, 1, Tp), lambda b, t: (b, 0, 0)),
            ],
            scratch_shapes=[pltpu.VMEM((1, Dp), f32)],
        ),
        compiler_params=pltpu.CompilerParams(
            dimension_semantics=("parallel", "arbitrary"),
            vmem_limit_bytes=VMEM_LIMIT),
    )(patches, pp["w_conv"], pp["b_conv"], pp["w_mlc"], pp["b_mlc"])


# ----------------------------------------------------------------------------
# Kernel B: decoder head + interpreter head
#   grid = (B, n_vocab_tiles).  cap_gen = cap_emb@Wv + feat@Wv + b  (folding),
#   cap_mlc = ((mask@cap_emb) * 1/count) @ W_int + b_int  (computed at v==0).
# ----------------------------------------------------------------------------
def decoder_forward(cap_emb, feat, mask, inv_cnt, pp):
    B, Lp, Dp = cap_emb.shape
    Vp = pp["w_voc"].shape[1]
    Tp = pp["w_int"].shape[1]
    tile_v = 256 if Vp % 256 == 0 else 128       # 256-wide for v6e/v7x MXU
    n_v = Vp // tile_v
    f32, bf16 = jnp.float32, jnp.bfloat16

    def kernel(cap_ref, fe_ref, wv_ref, bv_ref, m_ref, ic_ref, wi_ref, bi_ref,
               gen_ref, mlc_ref):
        cap = cap_ref[0]                                              # (Lp, Dp) bf16
        cg = jnp.dot(cap, wv_ref[...], preferred_element_type=f32)    # (Lp, tv)
        fv = jnp.dot(fe_ref[0], wv_ref[...], preferred_element_type=f32)  # (1, tv)
        gen_ref[0] = cg + fv + bv_ref[...]

        @pl.when(pl.program_id(1) == 0)
        def _():
            # masked mean pool: 0/1 bf16 mask matmul, 1/count applied in f32
            pooled = jnp.dot(m_ref[0], cap, preferred_element_type=f32) * ic_ref[0]
            mlc_ref[0] = (jnp.dot(pooled.astype(bf16), wi_ref[...],
                                  preferred_element_type=f32) + bi_ref[...])

    return pl.pallas_call(
        kernel,
        out_shape=(jax.ShapeDtypeStruct((B, Lp, Vp), f32),   # cap_gen (padded V)
                   jax.ShapeDtypeStruct((B, 1, Tp), f32)),   # cap_mlc (padded T)
        grid_spec=pltpu.PrefetchScalarGridSpec(
            num_scalar_prefetch=0,
            grid=(B, n_v),
            in_specs=[
                pl.BlockSpec((1, Lp, Dp), lambda b, v: (b, 0, 0)),
                pl.BlockSpec((1, 1, Dp), lambda b, v: (b, 0, 0)),
                pl.BlockSpec((Dp, tile_v), lambda b, v: (0, v)),
                pl.BlockSpec((1, tile_v), lambda b, v: (0, v)),
                pl.BlockSpec((1, 1, Lp), lambda b, v: (b, 0, 0)),
                pl.BlockSpec((1, 1, 1), lambda b, v: (b, 0, 0)),
                pl.BlockSpec((Dp, Tp), lambda b, v: (0, 0)),
                pl.BlockSpec((1, Tp), lambda b, v: (0, 0)),
            ],
            out_specs=[
                pl.BlockSpec((1, Lp, tile_v), lambda b, v: (b, 0, v)),
                pl.BlockSpec((1, 1, Tp), lambda b, v: (b, 0, 0)),
            ],
        ),
        compiler_params=pltpu.CompilerParams(
            dimension_semantics=("parallel", "arbitrary"),
            vmem_limit_bytes=VMEM_LIMIT),
    )(cap_emb, feat, pp["w_voc"], pp["b_voc"], mask, inv_cnt,
      pp["w_int"], pp["b_int"])


# ----------------------------------------------------------------------------
# Glue (im2col / embedding gather / padding) + ClsGenInt forward
# ----------------------------------------------------------------------------
def im2col_3x3(image_nchw):
    """NCHW image -> (B, H*W, 9*Cin) patches for a 3x3, stride-1, pad-1 conv."""
    B, Cin, H, W = image_nchw.shape
    x = jnp.transpose(image_nchw, (0, 2, 3, 1))                 # NHWC
    xp = jnp.pad(x, ((0, 0), (1, 1), (1, 1), (0, 0)))
    patches = []
    for dy in range(3):
        for dx in range(3):
            patches.append(xp[:, dy:dy + H, dx:dx + W, :])
    patches = jnp.concatenate(patches, axis=-1)                 # (B,H,W,9*Cin)
    return patches.reshape(B, H * W, 9 * Cin)


class ClsGenIntPallas:
    """JAX/Pallas equivalent of ClsGenInt (training path, caption provided)."""

    def __init__(self, params, conv_row_tile=512):
        self.p = params
        self.conv_row_tile = conv_row_tile
        K, D = params["w_conv"].shape
        T = params["w_mlc"].shape[1]
        V = params["w_voc"].shape[1]
        self.D, self.T, self.V = D, T, V
        self.Kp = _round_up(K, LANE)          # lane-dense im2col contraction dim
        self.Dp = _round_up(D, LANE)
        self.Tp = _round_up(T, LANE)
        self.Vp = _round_up(V, LANE)
        f32, bf16 = jnp.float32, jnp.bfloat16
        # Weights zero-padded to 128-lane widths once, bf16 for MXU operands.
        # (Zero padding is exact: padded channels stay 0 through ReLU/pool/dot.)
        self.pp = {
            "w_conv": _pad2(params["w_conv"], self.Kp, self.Dp).astype(bf16),
            "b_conv": _pad2(params["b_conv"], 1, self.Dp).astype(f32),
            "w_mlc":  _pad2(params["w_mlc"], self.Dp, self.Tp).astype(bf16),
            "b_mlc":  _pad2(params["b_mlc"], 1, self.Tp).astype(f32),
            "w_voc":  _pad2(params["w_voc"], self.Dp, self.Vp).astype(bf16),
            "b_voc":  _pad2(params["b_voc"], 1, self.Vp).astype(f32),
            "w_int":  _pad2(params["w_int"], self.Dp, self.Tp).astype(bf16),
            "b_int":  _pad2(params["b_int"], 1, self.Tp).astype(f32),
        }
        self.emb_p = jnp.pad(params["emb_table"],
                             ((0, 0), (0, self.Dp - D))).astype(bf16)
        # interpreter params are frozen in the torch module; inference-only
        # constants here, so "freeze" is a no-op.

    def __call__(self, image, history=None, caption=None, label=None,
                 threshold=0.15, bos_id=1, eos_id=2, pad_id=3, max_len=300):
        if caption is None:
            raise NotImplementedError("generation branch not implemented")

        B, _, H, W = image.shape
        HW = H * W
        L = caption.shape[1]
        Lp = _round_up(L, 8)
        f32, bf16 = jnp.float32, jnp.bfloat16

        # ----- glue: im2col (K padded to 128 -> lane-dense), bf16 -----
        patches = im2col_3x3(image)                              # (B, HW, K) f32
        K = patches.shape[-1]
        patches = jnp.pad(patches, ((0, 0), (0, 0), (0, self.Kp - K))).astype(bf16)

        # ----- glue: caption padding to a sublane multiple (exact: extra rows
        # are pads -> masked out of the pool, sliced off cap_gen) -----
        cap_p = jnp.pad(caption, ((0, 0), (0, Lp - L)), constant_values=pad_id)
        cap_emb = jnp.take(self.emb_p, cap_p, axis=0)            # (B, Lp, Dp) bf16

        not_pad = (cap_p != pad_id).astype(f32)                  # (B, Lp)
        counts = jnp.maximum(not_pad.sum(axis=1), 1.0)           # clamp all-pad rows
        mask = not_pad.astype(bf16).reshape(B, 1, Lp)            # 0/1 in bf16
        inv_cnt = (1.0 / counts).reshape(B, 1, 1).astype(f32)    # scale stays f32

        # ----- Pallas kernels -----
        feat, img_mlc_p = encoder_forward(patches, self.pp, HW,
                                          max_row_tile=self.conv_row_tile)
        cap_gen_p, cap_mlc_p = decoder_forward(cap_emb, feat, mask, inv_cnt, self.pp)

        cap_gen = cap_gen_p[:, :L, :self.V]
        img_mlc = img_mlc_p[:, 0, :self.T]
        cap_mlc = cap_mlc_p[:, 0, :self.T]
        return cap_gen, img_mlc, cap_mlc


# ----------------------------------------------------------------------------
# Plain-JAX f32 reference (for correctness check) + deterministic init + demo
# ----------------------------------------------------------------------------
def reference_forward(params, image, caption, pad_id=3):
    patches = im2col_3x3(image)                                     # (B, HW, K)
    h = jnp.maximum(jnp.einsum("bpk,kc->bpc", patches, params["w_conv"])
                    + params["b_conv"], 0.0)
    feat = h.mean(axis=1)                                           # (B, D)
    img_mlc = feat @ params["w_mlc"] + params["b_mlc"]
    cap_emb = jnp.take(params["emb_table"], caption, axis=0)        # (B, L, D)
    cap_gen = (jnp.einsum("bld,dv->blv", cap_emb + feat[:, None, :],
                          params["w_voc"]) + params["b_voc"])
    not_pad = (caption != pad_id).astype(jnp.float32)
    denom = jnp.maximum(not_pad.sum(axis=1, keepdims=True), 1.0)
    pooled = jnp.einsum("bl,bld->bd", not_pad, cap_emb) / denom
    cap_mlc = pooled @ params["w_int"] + params["b_int"]
    return cap_gen, img_mlc, cap_mlc


def init_params(key, cin=4, hidden=32, vocab=64, topics=16):
    ks = jax.random.split(key, 7)
    scale = 0.1
    return {
        # conv weight stored as (3,3,Cin,Cout) flattened to (9*Cin, Cout) to match
        # the (dy, dx, cin) patch ordering of im2col_3x3.
        "w_conv": scale * jax.random.normal(ks[0], (9 * cin, hidden), jnp.float32),
        "b_conv": scale * jax.random.normal(ks[1], (1, hidden), jnp.float32),
        "w_mlc":  scale * jax.random.normal(ks[2], (hidden, topics), jnp.float32),
        "b_mlc":  scale * jax.random.normal(ks[3], (1, topics), jnp.float32),
        "emb_table": scale * jax.random.normal(ks[4], (vocab, hidden), jnp.float32),
        "w_voc":  scale * jax.random.normal(ks[5], (hidden, vocab), jnp.float32),
        "b_voc":  jnp.zeros((1, vocab), jnp.float32),
        "w_int":  scale * jax.random.normal(ks[6], (hidden, topics), jnp.float32),
        "b_int":  jnp.zeros((1, topics), jnp.float32),
    }


if __name__ == "__main__":
    B, CIN, H, W = 2, 4, 16, 16
    L, D, V, T = 8, 32, 64, 16
    PAD_ID = 3

    key = jax.random.PRNGKey(0)
    k_img, k_cap, k_par = jax.random.split(key, 3)

    image = jax.random.normal(k_img, (B, CIN, H, W), jnp.float32)   # NCHW like PyTorch
    caption = jax.random.randint(k_cap, (B, L), 4, V, jnp.int32)
    # force last two tokens of each sequence to PAD so the pad_mask path is exercised
    pos = jnp.arange(L)[None, :]
    caption = jnp.where(pos >= L - 2, PAD_ID, caption)

    params = init_params(k_par, cin=CIN, hidden=D, vocab=V, topics=T)
    # conv_row_tile=128 -> 2 HW tiles at 16x16, exercising the multi-step
    # accumulation grid (production default is the largest tile that fits).
    model = ClsGenIntPallas(params, conv_row_tile=128)

    fwd = jax.jit(lambda img, cap: model(img, history=None, caption=cap,
                                         label=None, pad_id=PAD_ID))
    cap_gen, img_mlc, cap_mlc = fwd(image, caption)
    jax.block_until_ready((cap_gen, img_mlc, cap_mlc))

    assert cap_gen.shape == (B, L, V)
    assert img_mlc.shape == (B, T)
    assert cap_mlc.shape == (B, T)

    # correctness vs plain-JAX f32 reference (kernel uses bf16 MXU operands)
    ref_gen, ref_img, ref_cap = reference_forward(params, image, caption, PAD_ID)
    assert bool(jnp.allclose(cap_gen, ref_gen, rtol=5e-2, atol=5e-2))
    assert bool(jnp.allclose(img_mlc, ref_img, rtol=5e-2, atol=5e-2))
    assert bool(jnp.allclose(cap_mlc, ref_cap, rtol=5e-2, atol=5e-2))

    print("KERNEL_OK")
</pallas_src>

<mosaic_0001>
module attributes {stable_mosaic.version = 11 : i64} {
  func.func @kernel(%arg0: i32, %arg1: i32, %arg2: memref<1x128x128xbf16, #tpu.memory_space<vmem>>, %arg3: memref<128x128xbf16, #tpu.memory_space<vmem>>, %arg4: memref<1x128xf32, #tpu.memory_space<vmem>>, %arg5: memref<128x128xbf16, #tpu.memory_space<vmem>>, %arg6: memref<1x128xf32, #tpu.memory_space<vmem>>, %arg7: memref<1x1x128xbf16, #tpu.memory_space<vmem>>, %arg8: memref<1x1x128xf32, #tpu.memory_space<vmem>>, %arg9: memref<1x128xf32, #tpu.memory_space<vmem>>) attributes {dimension_semantics = [#tpu.dimension_semantics<parallel>, #tpu.dimension_semantics<arbitrary>], iteration_bounds = array<i64: 2, 2>, scalar_prefetch = 0 : i64, scratch_operands = 1 : i64, tpu.core_type = #tpu.core_type<tc>, window_params = [{transform_indices = @transform_0, window_bounds = array<i64: 1, 128, 128>}, {pipeline_mode = #tpu.pipeline_mode<synchronous>, transform_indices = @transform_1, window_bounds = array<i64: 128, 128>}, {pipeline_mode = #tpu.pipeline_mode<synchronous>, transform_indices = @transform_2, window_bounds = array<i64: 1, 128>}, {pipeline_mode = #tpu.pipeline_mode<synchronous>, transform_indices = @transform_3, window_bounds = array<i64: 128, 128>}, {pipeline_mode = #tpu.pipeline_mode<synchronous>, transform_indices = @transform_4, window_bounds = array<i64: 1, 128>}, {transform_indices = @transform_5, window_bounds = array<i64: 1, 1, 128>}, {transform_indices = @transform_6, window_bounds = array<i64: 1, 1, 128>}]} {
    %c0_i32 = arith.constant 0 : i32
    %0 = arith.cmpi eq, %arg1, %c0_i32 : i32
    %1 = arith.extui %0 : i1 to i32
    %c0_i32_0 = arith.constant 0 : i32
    %2 = arith.cmpi ne, %1, %c0_i32_0 : i32
    scf.if %2 {
      %cst_14 = arith.constant 0.000000e+00 : f32
      %20 = vector.broadcast %cst_14 : f32 to vector<1x128xf32>
      %c0_15 = arith.constant 0 : index
      %c0_16 = arith.constant 0 : index
      %21 = vector.load %arg9[%c0_15, %c0_16] : memref<1x128xf32, #tpu.memory_space<vmem>>, vector<1x128xf32>
      tpu.vector_store %arg9[%c0_15, %c0_16], %20 {strides = array<i32>} : memref<1x128xf32, #tpu.memory_space<vmem>>, vector<1x128xf32>,
    } else {
    }
    %c0 = arith.constant 0 : index
    %c0_1 = arith.constant 0 : index
    %c0_2 = arith.constant 0 : index
    %3 = vector.load %arg2[%c0, %c0_1, %c0_2] : memref<1x128x128xbf16, #tpu.memory_space<vmem>>, vector<1x128x128xbf16>
    %4 = vector.shape_cast %3 : vector<1x128x128xbf16> to vector<128x128xbf16>
    %c0_3 = arith.constant 0 : index
    %c0_4 = arith.constant 0 : index
    %5 = vector.load %arg3[%c0_3, %c0_4] : memref<128x128xbf16, #tpu.memory_space<vmem>>, vector<128x128xbf16>
    %cst = arith.constant dense<0.000000e+00> : vector<128x128xf32>
    %6 = tpu.matmul %4, %5, %cst {dimension_numbers = #tpu.dot_dimension_numbers<[1], [0], [0], [1], [0, 0, 1, 1], [], []>} : vector<128x128xbf16>, vector<128x128xbf16>, vector<128x128xf32> -> vector<128x128xf32>
    %c0_5 = arith.constant 0 : index
    %c0_6 = arith.constant 0 : index
    %7 = vector.load %arg4[%c0_5, %c0_6] : memref<1x128xf32, #tpu.memory_space<vmem>>, vector<1x128xf32>
    %8 = vector.broadcast %7 : vector<1x128xf32> to vector<128x128xf32>
    %9 = arith.addf %6, %8 : vector<128x128xf32>
    %cst_7 = arith.constant 0.000000e+00 : f32
    %10 = vector.broadcast %cst_7 : f32 to vector<128x128xf32>
    %11 = arith.maximumf %9, %10 : vector<128x128xf32>
    %c0_8 = arith.constant 0 : index
    %c0_9 = arith.constant 0 : index
    %12 = vector.load %arg9[%c0_8, %c0_9] : memref<1x128xf32, #tpu.memory_space<vmem>>, vector<1x128xf32>
    %cst_10 = arith.constant dense<0.000000e+00> : vector<128xf32>
    %13 = vector.multi_reduction <add>, %11, %cst_10 [0] : vector<128x128xf32> to vector<128xf32>
    %14 = vector.shape_cast %13 : vector<128xf32> to vector<1x128xf32>
    %15 = arith.addf %12, %14 : vector<1x128xf32>
    %c0_11 = arith.constant 0 : index
    %c0_12 = arith.constant 0 : index
    %16 = vector.load %arg9[%c0_11, %c0_12] : memref<1x128xf32, #tpu.memory_space<vmem>>, vector<1x128xf32>
    tpu.vector_store %arg9[%c0_11, %c0_12], %15 {strides = array<i32>} : memref<1x128xf32, #tpu.memory_space<vmem>>, vector<1x128xf32>,
    %c1_i32 = arith.constant 1 : i32
    %17 = arith.cmpi eq, %arg1, %c1_i32 : i32
    %18 = arith.extui %17 : i1 to i32
    %c0_i32_13 = arith.constant 0 : i32
    %19 = arith.cmpi ne, %18, %c0_i32_13 : i32
    scf.if %19 {
      %c0_14 = arith.constant 0 : index
      %c0_15 = arith.constant 0 : index
      %20 = vector.load %arg9[%c0_14, %c0_15] : memref<1x128xf32, #tpu.memory_space<vmem>>, vector<1x128xf32>
      %cst_16 = arith.constant 3.906250e-03 : f32
      %21 = vector.broadcast %cst_16 : f32 to vector<1x128xf32>
      %22 = arith.mulf %20, %21 : vector<1x128xf32>
      %23 = arith.truncf %22 : vector<1x128xf32> to vector<1x128xbf16>
      %c0_17 = arith.constant 0 : index
      %c0_18 = arith.constant 0 : index
      %c0_19 = arith.constant 0 : index
      %24 = vector.load %arg7[%c0_17, %c0_18, %c0_19] : memref<1x1x128xbf16, #tpu.memory_space<vmem>>, vector<1x1x128xbf16>
      %25 = vector.shape_cast %24 : vector<1x1x128xbf16> to vector<1x128xbf16>
      %26 = vector.shape_cast %23 : vector<1x128xbf16> to vector<1x1x128xbf16>
      tpu.vector_store %arg7[%c0_17, %c0_18, %c0_19], %26 {strides = array<i32>} : memref<1x1x128xbf16, #tpu.memory_space<vmem>>, vector<1x1x128xbf16>,
      %27 = arith.truncf %22 : vector<1x128xf32> to vector<1x128xbf16>
      %c0_20 = arith.constant 0 : index
      %c0_21 = arith.constant 0 : index
      %28 = vector.load %arg5[%c0_20, %c0_21] : memref<128x128xbf16, #tpu.memory_space<vmem>>, vector<128x128xbf16>
      %cst_22 = arith.constant dense<0.000000e+00> : vector<1x128xf32>
      %29 = tpu.matmul %27, %28, %cst_22 {dimension_numbers = #tpu.dot_dimension_numbers<[1], [0], [0], [1], [0, 0, 1, 1], [], []>} : vector<1x128xbf16>, vector<128x128xbf16>, vector<1x128xf32> -> vector<1x128xf32>
      %c0_23 = arith.constant 0 : index
      %c0_24 = arith.constant 0 : index
      %30 = vector.load %arg6[%c0_23, %c0_24] : memref<1x128xf32, #tpu.memory_space<vmem>>, vector<1x128xf32>
      %31 = arith.addf %29, %30 : vector<1x128xf32>
      %c0_25 = arith.constant 0 : index
      %c0_26 = arith.constant 0 : index
      %c0_27 = arith.constant 0 : index
      %32 = vector.load %arg8[%c0_25, %c0_26, %c0_27] : memref<1x1x128xf32, #tpu.memory_space<vmem>>, vector<1x1x128xf32>
      %33 = vector.shape_cast %32 : vector<1x1x128xf32> to vector<1x128xf32>
      %34 = vector.shape_cast %31 : vector<1x128xf32> to vector<1x1x128xf32>
      tpu.vector_store %arg8[%c0_25, %c0_26, %c0_27], %34 {strides = array<i32>} : memref<1x1x128xf32, #tpu.memory_space<vmem>>, vector<1x1x128xf32>,
    } else {
    }
    return
  }
  func.func @transform_0(%arg0: i32, %arg1: i32) -> (i32, i32, i32) {
    %c0_i32 = arith.constant 0 : i32
    %c0_i32_0 = arith.constant 0 : i32
    return %arg0, %arg1, %c0_i32 : i32, i32, i32
  }
  func.func @transform_1(%arg0: i32, %arg1: i32) -> (i32, i32) {
    %c0_i32 = arith.constant 0 : i32
    %c0_i32_0 = arith.constant 0 : i32
    %c0_i32_1 = arith.constant 0 : i32
    return %c0_i32, %c0_i32_0 : i32, i32
  }
  func.func @transform_2(%arg0: i32, %arg1: i32) -> (i32, i32) {
    %c0_i32 = arith.constant 0 : i32
    %c0_i32_0 = arith.constant 0 : i32
    %c0_i32_1 = arith.constant 0 : i32
    return %c0_i32, %c0_i32_0 : i32, i32
  }
  func.func @transform_3(%arg0: i32, %arg1: i32) -> (i32, i32) {
    %c0_i32 = arith.constant 0 : i32
    %c0_i32_0 = arith.constant 0 : i32
    %c0_i32_1 = arith.constant 0 : i32
    return %c0_i32, %c0_i32_0 : i32, i32
  }
  func.func @transform_4(%arg0: i32, %arg1: i32) -> (i32, i32) {
    %c0_i32 = arith.constant 0 : i32
    %c0_i32_0 = arith.constant 0 : i32
    %c0_i32_1 = arith.constant 0 : i32
    return %c0_i32, %c0_i32_0 : i32, i32
  }
  func.func @transform_5(%arg0: i32, %arg1: i32) -> (i32, i32, i32) {
    %c0_i32 = arith.constant 0 : i32
    %c0_i32_0 = arith.constant 0 : i32
    %c0_i32_1 = arith.constant 0 : i32
    return %arg0, %c0_i32, %c0_i32_0 : i32, i32, i32
  }
  func.func @transform_6(%arg0: i32, %arg1: i32) -> (i32, i32, i32) {
    %c0_i32 = arith.constant 0 : i32
    %c0_i32_0 = arith.constant 0 : i32
    %c0_i32_1 = arith.constant 0 : i32
    return %arg0, %c0_i32, %c0_i32_0 : i32, i32, i32
  }
}

module attributes {stable_mosaic.version = 11 : i64} {
  func.func @kernel(%arg0: i32, %arg1: i32, %arg2: memref<1x8x128xbf16, #tpu.memory_space<vmem>>, %arg3: memref<1x1x128xbf16, #tpu.memory_space<vmem>>, %arg4: memref<128x128xbf16, #tpu.memory_space<vmem>>, %arg5: memref<1x128xf32, #tpu.memory_space<vmem>>, %arg6: memref<1x1x8xbf16, #tpu.memory_space<vmem>>, %arg7: memref<1x1x1xf32, #tpu.memory_space<vmem>>, %arg8: memref<128x128xbf16, #tpu.memory_space<vmem>>, %arg9: memref<1x128xf32, #tpu.memory_space<vmem>>, %arg10: memref<1x8x128xf32, #tpu.memory_space<vmem>>, %arg11: memref<1x1x128xf32, #tpu.memory_space<vmem>>) attributes {dimension_semantics = [#tpu.dimension_semantics<parallel>, #tpu.dimension_semantics<arbitrary>], iteration_bounds = array<i64: 2, 1>, scalar_prefetch = 0 : i64, scratch_operands = 0 : i64, tpu.core_type = #tpu.core_type<tc>, window_params = [{transform_indices = @transform_0, window_bounds = array<i64: 1, 8, 128>}, {transform_indices = @transform_1, window_bounds = array<i64: 1, 1, 128>}, {transform_indices = @transform_2, window_bounds = array<i64: 128, 128>}, {transform_indices = @transform_3, window_bounds = array<i64: 1, 128>}, {transform_indices = @transform_4, window_bounds = array<i64: 1, 1, 8>}, {transform_indices = @transform_5, window_bounds = array<i64: 1, 1, 1>}, {pipeline_mode = #tpu.pipeline_mode<synchronous>, transform_indices = @transform_6, window_bounds = array<i64: 128, 128>}, {pipeline_mode = #tpu.pipeline_mode<synchronous>, transform_indices = @transform_7, window_bounds = array<i64: 1, 128>}, {transform_indices = @transform_8, window_bounds = array<i64: 1, 8, 128>}, {transform_indices = @transform_9, window_bounds = array<i64: 1, 1, 128>}]} {
    %c0 = arith.constant 0 : index
    %c0_0 = arith.constant 0 : index
    %c0_1 = arith.constant 0 : index
    %0 = vector.load %arg2[%c0, %c0_0, %c0_1] : memref<1x8x128xbf16, #tpu.memory_space<vmem>>, vector<1x8x128xbf16>
    %1 = vector.shape_cast %0 : vector<1x8x128xbf16> to vector<8x128xbf16>
    %c0_2 = arith.constant 0 : index
    %c0_3 = arith.constant 0 : index
    %2 = vector.load %arg4[%c0_2, %c0_3] : memref<128x128xbf16, #tpu.memory_space<vmem>>, vector<128x128xbf16>
    %cst = arith.constant dense<0.000000e+00> : vector<8x128xf32>
    %3 = tpu.matmul %1, %2, %cst {dimension_numbers = #tpu.dot_dimension_numbers<[1], [0], [0], [1], [0, 0, 1, 1], [], []>} : vector<8x128xbf16>, vector<128x128xbf16>, vector<8x128xf32> -> vector<8x128xf32>
    %c0_4 = arith.constant 0 : index
    %c0_5 = arith.constant 0 : index
    %c0_6 = arith.constant 0 : index
    %4 = vector.load %arg3[%c0_4, %c0_5, %c0_6] : memref<1x1x128xbf16, #tpu.memory_space<vmem>>, vector<1x1x128xbf16>
    %5 = vector.shape_cast %4 : vector<1x1x128xbf16> to vector<1x128xbf16>
    %c0_7 = arith.constant 0 : index
    %c0_8 = arith.constant 0 : index
    %6 = vector.load %arg4[%c0_7, %c0_8] : memref<128x128xbf16, #tpu.memory_space<vmem>>, vector<128x128xbf16>
    %cst_9 = arith.constant dense<0.000000e+00> : vector<1x128xf32>
    %7 = tpu.matmul %5, %6, %cst_9 {dimension_numbers = #tpu.dot_dimension_numbers<[1], [0], [0], [1], [0, 0, 1, 1], [], []>} : vector<1x128xbf16>, vector<128x128xbf16>, vector<1x128xf32> -> vector<1x128xf32>
    %8 = vector.broadcast %7 : vector<1x128xf32> to vector<8x128xf32>
    %9 = arith.addf %3, %8 : vector<8x128xf32>
    %c0_10 = arith.constant 0 : index
    %c0_11 = arith.constant 0 : index
    %10 = vector.load %arg5[%c0_10, %c0_11] : memref<1x128xf32, #tpu.memory_space<vmem>>, vector<1x128xf32>
    %11 = vector.broadcast %10 : vector<1x128xf32> to vector<8x128xf32>
    %12 = arith.addf %9, %11 : vector<8x128xf32>
    %c0_12 = arith.constant 0 : index
    %c0_13 = arith.constant 0 : index
    %c0_14 = arith.constant 0 : index
    %13 = vector.load %arg10[%c0_12, %c0_13, %c0_14] : memref<1x8x128xf32, #tpu.memory_space<vmem>>, vector<1x8x128xf32>
    %14 = vector.shape_cast %13 : vector<1x8x128xf32> to vector<8x128xf32>
    %15 = vector.shape_cast %12 : vector<8x128xf32> to vector<1x8x128xf32>
    tpu.vector_store %arg10[%c0_12, %c0_13, %c0_14], %15 {strides = array<i32>} : memref<1x8x128xf32, #tpu.memory_space<vmem>>, vector<1x8x128xf32>,
    %c0_i32 = arith.constant 0 : i32
    %16 = arith.cmpi eq, %arg1, %c0_i32 : i32
    %17 = arith.extui %16 : i1 to i32
    %c0_i32_15 = arith.constant 0 : i32
    %18 = arith.cmpi ne, %17, %c0_i32_15 : i32
    scf.if %18 {
      %c0_16 = arith.constant 0 : index
      %c0_17 = arith.constant 0 : index
      %c0_18 = arith.constant 0 : index
      %19 = vector.load %arg6[%c0_16, %c0_17, %c0_18] : memref<1x1x8xbf16, #tpu.memory_space<vmem>>, vector<1x1x8xbf16>
      %20 = vector.shape_cast %19 : vector<1x1x8xbf16> to vector<1x8xbf16>
      %cst_19 = arith.constant dense<0.000000e+00> : vector<1x128xf32>
      %21 = tpu.matmul %20, %1, %cst_19 {dimension_numbers = #tpu.dot_dimension_numbers<[1], [0], [0], [1], [0, 0, 1, 1], [], []>} : vector<1x8xbf16>, vector<8x128xbf16>, vector<1x128xf32> -> vector<1x128xf32>
      %c0_20 = arith.constant 0 : index
      %c0_21 = arith.constant 0 : index
      %c0_22 = arith.constant 0 : index
      %22 = vector.load %arg7[%c0_20, %c0_21, %c0_22] : memref<1x1x1xf32, #tpu.memory_space<vmem>>, vector<1x1x1xf32>
      %23 = vector.shape_cast %22 : vector<1x1x1xf32> to vector<1x1xf32>
      %24 = vector.broadcast %23 : vector<1x1xf32> to vector<1x128xf32>
      %25 = arith.mulf %21, %24 : vector<1x128xf32>
      %26 = arith.truncf %25 : vector<1x128xf32> to vector<1x128xbf16>
      %c0_23 = arith.constant 0 : index
      %c0_24 = arith.constant 0 : index
      %27 = vector.load %arg8[%c0_23, %c0_24] : memref<128x128xbf16, #tpu.memory_space<vmem>>, vector<128x128xbf16>
      %cst_25 = arith.constant dense<0.000000e+00> : vector<1x128xf32>
      %28 = tpu.matmul %26, %27, %cst_25 {dimension_numbers = #tpu.dot_dimension_numbers<[1], [0], [0], [1], [0, 0, 1, 1], [], []>} : vector<1x128xbf16>, vector<128x128xbf16>, vector<1x128xf32> -> vector<1x128xf32>
      %c0_26 = arith.constant 0 : index
      %c0_27 = arith.constant 0 : index
      %29 = vector.load %arg9[%c0_26, %c0_27] : memref<1x128xf32, #tpu.memory_space<vmem>>, vector<1x128xf32>
      %30 = arith.addf %28, %29 : vector<1x128xf32>
      %c0_28 = arith.constant 0 : index
      %c0_29 = arith.constant 0 : index
      %c0_30 = arith.constant 0 : index
      %31 = vector.load %arg11[%c0_28, %c0_29, %c0_30] : memref<1x1x128xf32, #tpu.memory_space<vmem>>, vector<1x1x128xf32>
      %32 = vector.shape_cast %31 : vector<1x1x128xf32> to vector<1x128xf32>
      %33 = vector.shape_cast %30 : vector<1x128xf32> to vector<1x1x128xf32>
      tpu.vector_store %arg11[%c0_28, %c0_29, %c0_30], %33 {strides = array<i32>} : memref<1x1x128xf32, #tpu.memory_space<vmem>>, vector<1x1x128xf32>,
    } else {
    }
    return
  }
  func.func @transform_0(%arg0: i32, %arg1: i32) -> (i32, i32, i32) {
    %c0_i32 = arith.constant 0 : i32
    %c0_i32_0 = arith.constant 0 : i32
    %c0_i32_1 = arith.constant 0 : i32
    return %arg0, %c0_i32, %c0_i32_0 : i32, i32, i32
  }
  func.func @transform_1(%arg0: i32, %arg1: i32) -> (i32, i32, i32) {
    %c0_i32 = arith.constant 0 : i32
    %c0_i32_0 = arith.constant 0 : i32
    %c0_i32_1 = arith.constant 0 : i32
    return %arg0, %c0_i32, %c0_i32_0 : i32, i32, i32
  }
  func.func @transform_2(%arg0: i32, %arg1: i32) -> (i32, i32) {
    %c0_i32 = arith.constant 0 : i32
    %c0_i32_0 = arith.constant 0 : i32
    return %c0_i32, %arg1 : i32, i32
  }
  func.func @transform_3(%arg0: i32, %arg1: i32) -> (i32, i32) {
    %c0_i32 = arith.constant 0 : i32
    %c0_i32_0 = arith.constant 0 : i32
    return %c0_i32, %arg1 : i32, i32
  }
  func.func @transform_4(%arg0: i32, %arg1: i32) -> (i32, i32, i32) {
    %c0_i32 = arith.constant 0 : i32
    %c0_i32_0 = arith.constant 0 : i32
    %c0_i32_1 = arith.constant 0 : i32
    return %arg0, %c0_i32, %c0_i32_0 : i32, i32, i32
  }
  func.func @transform_5(%arg0: i32, %arg1: i32) -> (i32, i32, i32) {
    %c0_i32 = arith.constant 0 : i32
    %c0_i32_0 = arith.constant 0 : i32
    %c0_i32_1 = arith.constant 0 : i32
    return %arg0, %c0_i32, %c0_i32_0 : i32, i32, i32
  }
  func.func @transform_6(%arg0: i32, %arg1: i32) -> (i32, i32) {
    %c0_i32 = arith.constant 0 : i32
    %c0_i32_0 = arith.constant 0 : i32
    %c0_i32_1 = arith.constant 0 : i32
    return %c0_i32, %c0_i32_0 : i32, i32
  }
  func.func @transform_7(%arg0: i32, %arg1: i32) -> (i32, i32) {
    %c0_i32 = arith.constant 0 : i32
    %c0_i32_0 = arith.constant 0 : i32
    %c0_i32_1 = arith.constant 0 : i32
    return %c0_i32, %c0_i32_0 : i32, i32
  }
  func.func @transform_8(%arg0: i32, %arg1: i32) -> (i32, i32, i32) {
    %c0_i32 = arith.constant 0 : i32
    %c0_i32_0 = arith.constant 0 : i32
    return %arg0, %c0_i32, %arg1 : i32, i32, i32
  }
  func.func @transform_9(%arg0: i32, %arg1: i32) -> (i32, i32, i32) {
    %c0_i32 = arith.constant 0 : i32
    %c0_i32_0 = arith.constant 0 : i32
    %c0_i32_1 = arith.constant 0 : i32
    return %arg0, %c0_i32, %c0_i32_0 : i32, i32, i32
  }
}

</mosaic_0001>

<bundles_post_ra>
// kernel: _lambda_.2
= control target key start
LH: loop header
LB: loop body
LE: loop exit
PB: predicated region body
PF: predicated region fallthrough
CT: control target
= control target key end

     0   :  { %12 = vsyncpa [#allocation4], 0  ;;  %s1365_s0 = inlined_call_operand.vmem [shape: bf16[2,256,128], index: 0, kind: input, shape index: {}]   ;;  %s1366_s1 = inlined_call_operand.vmem [shape: bf16[128,128], index: 1, kind: input, shape index: {}]   ;;  %s1367_s2 = inlined_call_operand.vmem [shape: f32[1,128], index: 2, kind: input, shape index: {}]   ;;  %s1368_s3 = inlined_call_operand.vmem [shape: bf16[128,128], index: 3, kind: input, shape index: {}]   ;;  %s1369_s4 = inlined_call_operand.vmem [shape: f32[1,128], index: 4, kind: input, shape index: {}]   ;;  %s1370_s5 = inlined_call_operand.vmem [shape: bf16[2,1,128], index: 5, kind: output, shape index: {0}]   ;;  %s1371_s6 = inlined_call_operand.hbm [shape: f32[2,1,128], index: 6, kind: output, shape index: {1}]  }
   0x1   :  { %14 = vsyncpa [#allocation4 + $0x1], 0  ;;  %s1157_s21 = smov 0   ;;  %s1159_s22 = smov 0  }
   0x2   :  { %s1161_s23 = smov 0   ;;  %s1163_s24 = smov 0  }
   0x3   :  { %s1165_s25 = smov 0   ;;  %s1167_s26 = smov 0  }
   0x4   :  { %s1169_s27 = smov 0   ;;  %s1171_s28 = smov 0  }
   0x5 LB: > { %1374 = sst [smem:[#allocation6_spill]] %s1112_s27  ;;  %s793_s29 = sadd.s32 4294967295, %s1116_s28   ;;  %s1116_s28 = sphi %s1171_s28, %s20_s28   ;;  %s1112_s27 = sphi %s1169_s27, %s1381_s27   ;;  %s1108_s26 = sphi %s1167_s26, %s1386_s26   ;;  %s1104_s25 = sphi %s1165_s25, %s1379_s25   ;;  %s1100_s24 = sphi %s1163_s24, %s1385_s24   ;;  %s1096_s23 = sphi %s1161_s23, %s1384_s23   ;;  %s1092_s22 = sphi %s1159_s22, %s1383_s22   ;;  %s1088_s21 = sphi %s1157_s21, %s1382_s21  }
   0x6   : > { %s794_s30 = sadd.s32 4294967294, %s1116_s28   ;;  %s29_s7 = sadd.s32 1, %s1108_s26 }
   0x7   : > { %p30_p0 = scmp.ge.s32.totalorder %s29_s7, 2  ;;  %s32_s8 = sadd.s32 1, %s1112_s27 }
   0x8   : > { %p187_p1 = scmp.ne.s32.totalorder %s1096_s23, %s1092_s22  ;;  %p188_p2 = scmp.eq.s32.totalorder %s793_s29, 3 }
   0x9   : > { %s1388_s7 = smov (%p30_p0, %s29_s7), 0  ;;  %s1390_s8 = smov (!%p30_p0, %s32_s8), %s1112_s27 }
   0xa   : > { %1375 = sst [smem:[#allocation7_spill]] %s1388_s7  ;;  %p1206_p3 = por %p188_p2, %p187_p1 }
   0xb   : > { %p193_p4 = scmp.ne.s32.totalorder %s1092_s22, %s1088_s21  ;;  %p34_p5 = scmp.ge.s32.totalorder %s1390_s8, 2 }
   0xc   : > { %p194_p6 = scmp.eq.s32.totalorder %s794_s30, 3  ;;  %p797_p7 = scmp.ge.s32.totalorder %s1116_s28, 1 }
   0xd   : > { %p237_p8 = scmp.lt.s32.totalorder %s1116_s28, 5  ;;  %s1392_s8 = smov (%p34_p5, %s1390_s8), 0 }
   0xe   : > { %1377 = sst [smem:[#allocation8_spill]] %s1392_s8  ;;  %p1216_p9 = por %p194_p6, %p193_p4 }
   0xf   : > { %p238_p10 = pnand %p797_p7, %p237_p8  ;;  %s174_s11 = ssub.s32 %s1112_s27, %s1392_s8 }
  0x10   : > { %s177_s12 = sadd.s32 1, %s1096_s23  ;;  %p175_p11 = scmp.eq.s32.totalorder %s174_s11, 0 }
  0x11   : > { %241 = sbr.rel (%p238_p10) target bundleno = 579 (0x243), region = 40  ;;  %s271_s14 = sand.u32 (!%p238_p10), 1, %s1092_s22  }
  0x12   : > { %s1224_s13 = scalar_select %p175_p11, %s1096_s23, %s177_s12  }
  0x13   : > { %s798_s15 = sshll.u32 (!%p238_p10), %s1100_s24, 4  ;;  %p274_p12 = scmp.lt.s32.totalorder (!%p238_p10), %s1104_s25, 1 }
  0x14   : > { %p276_p13 = scmp.lt.s32.totalorder (!%p238_p10), %s798_s15, 31  ;;  %s1242_s7 = scalar_lea.vmem (!%p238_p10), [#allocation3], %s271_s14 }
  0x15   : > { %p801_p0 = scmp.ne.s32.totalorder (!%p238_p10), %s1100_s24, 0 }
  0x18   : > { %s275_s16 = scalar_select %p274_p12, %s1104_s25, 1 }
  0x19   : > { %s1394_s15 = smov (!%p276_p13, %s798_s15), 31  ;;  %290 = sbr.rel (%p801_p0) target bundleno = 32 (0x20), region = 44 }
  0x1a   : > { %s799_s17 = sshll.u32 %s275_s16, 5  ;;  %s1233_s20 = scalar_lea.vmem %s1370_s5, %s275_s16  ;;  %v1118_v0 = vmov (!%p801_p0), 0.0  }
  0x1b   : > { %s279_s29 = sadd.s32 %s799_s17, %s1394_s15  ;;  %291 = vst [vmem:[#allocation2] sm:$0x1] (!%p801_p0), %v1118_v0 }
  0x1c   : > { %s800_s30 = sshll.u32 %s279_s29, 2 }
  0x1d   : > { %s1238_s8 = scalar_lea.vmem %s1365_s0, %s800_s30 }
  0x20 PF: > { %v998_v1 = vld [vmem:[%s1366_s1] sm:$0xff]   ;;  %v999_v2 = vld [vmem:[%s1366_s1 + $0x8] sm:$0xff]   ;;  %v1000_v3 = vld [vmem:[%s1366_s1 + $0x10] sm:$0xff]   ;;  %p819_p1 = scmp.ne.s32.totalorder %s1100_s24, 1 }
  0x21   : > { %856 = vmatprep.subr.bf16.mxu0 %v998_v1  ;;  %908 = vmatprep.subr.bf16.mxu1 %v998_v1  ;;  %v1001_v4 = vld [vmem:[%s1366_s1 + $0x18] sm:$0xff]   ;;  %v1006_v5 = vld [vmem:[%s1238_s8] sm:$0xff]   ;;  %v1003_v8 = vld [vmem:[%s1366_s1 + $0x28] sm:$0xff]   ;;  %vm1120_vm0 = vmmov (!%p819_p1), 0   ;;  %vm571_vm1 = vcmask (!%p819_p1), 1040384  }
  0x22   : > { %857 = vmatpush3.bf16.msra.mxu0 %v998_v1  ;;  %916 = vmatpush3.bf16.msra.mxu1 %v998_v1  ;;  %v1002_v6 = vld [vmem:[%s1366_s1 + $0x20] sm:$0xff]   ;;  %v1004_v9 = vld [vmem:[%s1366_s1 + $0x30] sm:$0xff]   ;;  %v1005_v10 = vld [vmem:[%s1366_s1 + $0x38] sm:$0xff]   ;;  %vm572_vm2 = vsmask.f32 (!%p819_p1), 256 }
  0x23   : > { %858 = vmatprep.subr.bf16.mxu0 %v999_v2  ;;  %909 = vmatprep.subr.bf16.mxu1 %v999_v2  ;;  %v1010_v7 = vld [vmem:[%s1238_s8 + $0x20] sm:$0xff]   ;;  %v1007_v11 = vld [vmem:[%s1238_s8 + $0x8] sm:$0xff]   ;;  %v1008_v13 = vld [vmem:[%s1238_s8 + $0x10] sm:$0xff]  }
  0x24   : > { %872 = vmatprep.mubr.bf16.mxu0 %v1006_v5  ;;  %880 = vmatprep.mubr.bf16.mxu1 %v1010_v7  ;;  %v1011_v12 = vld [vmem:[%s1238_s8 + $0x28] sm:$0xff]   ;;  %v1012_v14 = vld [vmem:[%s1238_s8 + $0x30] sm:$0xff]   ;;  %v1009_v15 = vld [vmem:[%s1238_s8 + $0x18] sm:$0xff]  }
  0x25   : > { %v1013_v16 = vld [vmem:[%s1238_s8 + $0x38] sm:$0xff]   ;;  %v802_v17 = vld [vmem:[%s1367_s2] ss:$0 sm:$0xff]  ;;  %vm573_vm3 = vmand (!%p819_p1), %vm571_vm1, %vm572_vm2 }
  0x26   : > { %859 = vmatpush3.bf16.msra.mxu0 %v999_v2  ;;  %917 = vmatpush3.bf16.msra.mxu1 %v999_v2 }
  0x27   : > { %860 = vmatprep.subr.bf16.mxu0 %v1000_v3  ;;  %910 = vmatprep.subr.bf16.mxu1 %v1000_v3 }
  0x2a   : > { %861 = vmatpush3.bf16.msra.mxu0 %v1000_v3  ;;  %918 = vmatpush3.bf16.msra.mxu1 %v1000_v3 }
  0x2b   : > { %862 = vmatprep.subr.bf16.mxu0 %v1001_v4  ;;  %911 = vmatprep.subr.bf16.mxu1 %v1001_v4 }
  0x2e   : > { %863 = vmatpush3.bf16.msra.mxu0 %v1001_v4  ;;  %919 = vmatpush3.bf16.msra.mxu1 %v1001_v4 }
  0x2f   : > { %864 = vmatprep.subr.bf16.mxu0 %v1002_v6  ;;  %912 = vmatprep.subr.bf16.mxu1 %v1002_v6 }
  0x32   : > { %865 = vmatpush3.bf16.msra.mxu0 %v1002_v6  ;;  %920 = vmatpush3.bf16.msra.mxu1 %v1002_v6 }
  0x33   : > { %866 = vmatprep.subr.bf16.mxu0 %v1003_v8  ;;  %913 = vmatprep.subr.bf16.mxu1 %v1003_v8 }
  0x36   : > { %867 = vmatpush3.bf16.msra.mxu0 %v1003_v8  ;;  %921 = vmatpush3.bf16.msra.mxu1 %v1003_v8 }
  0x37   : > { %868 = vmatprep.subr.bf16.mxu0 %v1004_v9  ;;  %914 = vmatprep.subr.bf16.mxu1 %v1004_v9 }
  0x3a   : > { %869 = vmatpush3.bf16.msra.mxu0 %v1004_v9  ;;  %922 = vmatpush3.bf16.msra.mxu1 %v1004_v9 }
  0x3b   : > { %870 = vmatprep.subr.bf16.mxu0 %v1005_v10  ;;  %915 = vmatprep.subr.bf16.mxu1 %v1005_v10 }
  0x3e   : > { %871 = vmatpush3.bf16.msra.mxu0 %v1005_v10  ;;  %923 = vmatpush3.bf16.msra.mxu1 %v1005_v10 }
  0x41   : > { %873 = vmatmul.mubr.bf16.vlgmr.msra.gmra.mrb[0].mxu0 %v1007_v11  ;;  %881 = vmatmul.mubr.bf16.vlgmr.msra.gmra.mrb[0].mxu1 %v1011_v12 }
  0x42   : > { %876 = vmatprep.mubr.bf16.mxu0 %v1008_v13  ;;  %884 = vmatprep.mubr.bf16.mxu1 %v1012_v14 }
  0x49   : > { %877 = vmatmul.mubr.bf16.gmra.mrb[4].mxu0 %v1009_v15  ;;  %885 = vmatmul.mubr.bf16.gmra.mrb[4].mxu1 %v1013_v16 }
 0x114   : > { %v874_v18 = vpop.f32.mrb[0].mxu0  ;;  %v882_v19 = vpop.f32.mrb[0].mxu1 }
 0x115   : > { %v461_v20 = vpop.f32.mrb[1].mxu0  ;;  %v493_v21 = vpop.f32.mrb[1].mxu1  ;;  %v470_v27 = vadd.f32 %v874_v18, %v802_v17  ;;  %v502_v59 = vadd.f32 %v882_v19, %v802_v17 }
 0x116   : > { %v462_v22 = vadd.f32 %v802_v17, %v461_v20  ;;  %v875_v23 = vpop.f32.mrb[2].mxu0  ;;  %v883_v24 = vpop.f32.mrb[2].mxu1  ;;  %v494_v52 = vadd.f32 %v802_v17, %v493_v21 }
 0x117   : > { %v464_v25 = vpop.f32.mrb[3].mxu0  ;;  %v496_v26 = vpop.f32.mrb[3].mxu1  ;;  %v473_v30 = vadd.f32 %v875_v23, %v802_v17  ;;  %v526_v32 = vmax.f32 %v470_v27, 0.0  ;;  %v505_v62 = vadd.f32 %v883_v24, %v802_v17  ;;  %v534_v1 = vmax.f32 %v502_v59, 0.0  ;;  %v540_v23 = vld [vmem:[#allocation2] sm:$0x1] }
 0x118   : > { %v465_v28 = vadd.f32 %v802_v17, %v464_v25  ;;  %v524_v29 = vmax.f32 %v462_v22, 0.0  ;;  %v532_v57 = vmax.f32 %v494_v52, 0.0  ;;  %v497_v58 = vadd.f32 %v802_v17, %v496_v26  ;;  %v1015_v27 = vld [vmem:[%s1368_s3 + $0x8] sm:$0xff] (!%p819_p1)  }
 0x119   : > { %v527_v38 = vmax.f32 %v473_v30, 0.0  ;;  %v535_v3 = vmax.f32 %v505_v62, 0.0  ;;  %v1119_v26 = vmov (!%p819_p1), 0.0  }
 0x11a   : > { %v525_v31 = vmax.f32 %v465_v28, 0.0  ;;  %v533_v63 = vmax.f32 %v497_v58, 0.0  ;;  %888 = vmatprep.subr.bf16.mxu0 (!%p819_p1), %v1119_v26  ;;  %904 = vmatprep.mubr.msk.bf16.mxu0 (!%p819_p1), %vm1120_vm0, %v1119_v26  ;;  %v1016_v28 = vld [vmem:[%s1368_s3 + $0x10] sm:$0xff] (!%p819_p1)  }
 0x11c   : > { %v541_v33 = vadd.f32 %v525_v31, %v524_v29  ;;  %v878_v34 = vpop.f32.mrb[4].mxu0  ;;  %v886_v35 = vpop.f32.mrb[4].mxu1  ;;  %v1017_v31 = vld [vmem:[%s1368_s3 + $0x18] sm:$0xff] (!%p819_p1)  }
 0x11d   : > { %v477_v36 = vpop.f32.mrb[5].mxu0  ;;  %v509_v37 = vpop.f32.mrb[5].mxu1  ;;  %v486_v45 = vadd.f32 %v878_v34, %v802_v17  ;;  %v518_v7 = vadd.f32 %v886_v35, %v802_v17  ;;  %v1018_v35 = vld [vmem:[%s1368_s3 + $0x20] sm:$0xff] (!%p819_p1)  }
 0x11e   : > { %v542_v39 = vadd.f32 %v541_v33, %v526_v32  ;;  %v478_v40 = vadd.f32 %v802_v17, %v477_v36  ;;  %v879_v41 = vpop.f32.mrb[6].mxu0  ;;  %v887_v42 = vpop.f32.mrb[6].mxu1  ;;  %v510_v0 = vadd.f32 %v802_v17, %v509_v37  ;;  %v574_v32 = vld [vmem:[%s1233_s20] sm:$0x1] (!%p819_p1)  ;;  %v1019_v36 = vld [vmem:[%s1368_s3 + $0x28] sm:$0xff] (!%p819_p1)   ;;  %v1020_v37 = vld [vmem:[%s1368_s3 + $0x30] sm:$0xff] (!%p819_p1)  }
 0x11f   : > { %v480_v43 = vpop.f32.mrb[7].mxu0  ;;  %v512_v44 = vpop.f32.mrb[7].mxu1  ;;  %v489_v50 = vadd.f32 %v879_v41, %v802_v17  ;;  %v530_v53 = vmax.f32 %v486_v45, 0.0  ;;  %v521_v10 = vadd.f32 %v887_v42, %v802_v17  ;;  %v538_v12 = vmax.f32 %v518_v7, 0.0 }
 0x120   : > { %v528_v46 = vmax.f32 %v478_v40, 0.0  ;;  %v543_v47 = vadd.f32 %v542_v39, %v527_v38  ;;  %v481_v48 = vadd.f32 %v802_v17, %v480_v43  ;;  %v536_v5 = vmax.f32 %v510_v0, 0.0  ;;  %v1021_v38 = vld [vmem:[%s1368_s3 + $0x38] sm:$0xff] (!%p819_p1)   ;;  %v593_v39 = vld [vmem:[%s1369_s4] sm:$0x1] (!%p819_p1) }
 0x121   : > { %v531_v55 = vmax.f32 %v489_v50, 0.0  ;;  %v513_v6 = vadd.f32 %v802_v17, %v512_v44  ;;  %v539_v14 = vmax.f32 %v521_v10, 0.0  ;;  %v1014_v17 = vld [vmem:[%s1368_s3] sm:$0xff] (!%p819_p1)  }
 0x122   : > { %v544_v49 = vadd.f32 %v543_v47, %v528_v46  ;;  %v529_v51 = vmax.f32 %v481_v48, 0.0  ;;  %889 = vmatpush3.bf16.msra.mxu0 (!%p819_p1), %v1014_v17 }
 0x123   : > { %v537_v11 = vmax.f32 %v513_v6, 0.0  ;;  %890 = vmatprep.subr.bf16.mxu0 (!%p819_p1), %v1119_v26 }
 0x124   : > { %v545_v54 = vadd.f32 %v544_v49, %v529_v51 }
 0x126   : > { %v546_v56 = vadd.f32 %v545_v54, %v530_v53  ;;  %891 = vmatpush3.bf16.msra.mxu0 (!%p819_p1), %v1015_v27 }
 0x127   : > { %892 = vmatprep.subr.bf16.mxu0 (!%p819_p1), %v1119_v26 }
 0x128   : > { %v547_v60 = vadd.f32 %v546_v56, %v531_v55 }
 0x12a   : > { %v548_v61 = vadd.f32 %v547_v60, %v532_v57  ;;  %893 = vmatpush3.bf16.msra.mxu0 (!%p819_p1), %v1016_v28 }
 0x12b   : > { %894 = vmatprep.subr.bf16.mxu0 (!%p819_p1), %v1119_v26 }
 0x12c   : > { %v549_v2 = vadd.f32 %v548_v61, %v533_v63 }
 0x12e   : > { %v550_v4 = vadd.f32 %v549_v2, %v534_v1  ;;  %895 = vmatpush3.bf16.msra.mxu0 (!%p819_p1), %v1017_v31 }
 0x12f   : > { %896 = vmatprep.subr.bf16.mxu0 (!%p819_p1), %v1119_v26 }
 0x130   : > { %v551_v8 = vadd.f32 %v550_v4, %v535_v3 }
 0x132   : > { %v552_v9 = vadd.f32 %v551_v8, %v536_v5  ;;  %897 = vmatpush3.bf16.msra.mxu0 (!%p819_p1), %v1018_v35 }
 0x133   : > { %898 = vmatprep.subr.bf16.mxu0 (!%p819_p1), %v1119_v26 }
 0x134   : > { %v553_v13 = vadd.f32 %v552_v9, %v537_v11 }
 0x136   : > { %v554_v15 = vadd.f32 %v553_v13, %v538_v12  ;;  %899 = vmatpush3.bf16.msra.mxu0 (!%p819_p1), %v1019_v36 }
 0x137   : > { %900 = vmatprep.subr.bf16.mxu0 (!%p819_p1), %v1119_v26 }
 0x138   : > { %v555_v16 = vadd.f32 %v554_v15, %v539_v14 }
 0x13a   : > { %v556_v18 = vrot.slane %v555_v16, 4  ;;  %901 = vmatpush3.bf16.msra.mxu0 (!%p819_p1), %v1020_v37 }
 0x13b   : > { %902 = vmatprep.subr.bf16.mxu0 (!%p819_p1), %v1119_v26 }
 0x13c   : > { %v557_v19 = vadd.f32 %v556_v18, %v555_v16 }
 0x13e   : > { %v558_v20 = vrot.slane %v557_v19, 2  ;;  %903 = vmatpush3.bf16.msra.mxu0 (!%p819_p1), %v1021_v38 }
 0x140   : > { %v559_v21 = vadd.f32 %v558_v20, %v557_v19 }
 0x142   : > { %v560_v22 = vrot.slane %v559_v21, 1  ;;  %567 = sbr.rel (%p819_p1) target bundleno = 555 (0x22b), region = 48 }
 0x144   : > { %v561_v24 = vadd.f32 %v560_v22, %v559_v21 }
 0x146   : > { %v562_v25 = vadd.f32 %v561_v24, %v540_v23 }
 0x148   : > { %563 = vst [vmem:[#allocation2] sm:$0x1] %v562_v25 }
 0x14f   : > { %v568_v29 = vld [vmem:[#allocation2] sm:$0x1] }
 0x150   : > { %v569_v30 = vmul.f32 0.00390625, %v568_v29 }
 0x152   : > { %v570_v33 = vpack.c.bf16 %v569_v30, %v569_v30 }
 0x154   : > { %v575_v34 = vsel %vm573_vm3, %v570_v33, %v574_v32  ;;  %905 = vmatmul.mubr.bf16.vlgmr.msra.gmra.mrb[0].mxu0 %v570_v33 }
 0x155   : > { %576 = vst [vmem:[%s1233_s20] sm:$0x1] %v575_v34 }
 0x227   : > { %v676_v40 = vpop.f32.mrb[0].mxu0 }
 0x228   : > { %v677_v41 = vadd.f32 %v676_v40, %v593_v39  ;;  %v906_v42 = vpop.f32.mrb[1].mxu0 }
 0x229   : > { %v679_v43 = vpop.f32.mrb[2].mxu0 }
 0x22a   : > { %682 = vst [vmem:[%s1242_s7] sm:$0x1] %v677_v41  ;;  %v907_v44 = vpop.f32.mrb[3].mxu0 }
 0x22b PF: > { %s828_s15 = sshll.u32 %s1104_s25, 4  ;;  %s702_s19 = sshll.u32 %s1242_s7, 4  ;;  %s703_s19 = int_to_ptr.vmem [resolvable:$true] %s702_s19 }
 0x22c   : > { %s1315_s17 = scalar_lea.hbm %s1371_s6, %s828_s15  ;;  %s687_s29 = scalar_lea.sflag [#allocation4], %s271_s14 }
 0x22d   : > { %s1022_s27 = scalar_lea.vmem %s703_s19, 16  ;;  %s1121_s8 = smov [#allocation3]  }
 0x22e   : > { %p1023_p2 = scmp.ne.s32.totalorder %s703_s19, %s1022_s27  ;;  %s1026_s30 = sshll.u32 %s1121_s8, 4  ;;  %s1027_s30 = int_to_ptr.vmem [resolvable:$false] %s1026_s30 }
 0x22f   : > { %s1028_s11 = scalar_lea.vmem %s1027_s30, 32  ;;  %p1029_p6 = scmp.lt.s32.totalorder %s703_s19, %s1027_s30 }
 0x230   : > { %p1024_p4 = pnand %p1023_p2, %p1206_p3  ;;  %p1030_p7 = scmp.lt.s32.totalorder %s1028_s11, %s1022_s27 }
 0x232   : > { %p1025_p5 = pneg %p1024_p4  ;;  %p1031_p8 = por %p1030_p7, %p1029_p6 }
 0x234   : > { %p1032_p10 = pnand %p1031_p8, %p1025_p5 }
 0x236   : > { %1035 = shalt.err (!%p1032_p10)
}
 0x237   : > { %s1036_s25 = scalar_lea.hbm %s1315_s17, 16  ;;  %s1040_s12 = scalar_lea.hbm %s1371_s6, 32 }
 0x238   : > { %p1037_p11 = scmp.ne.s32.totalorder %s1315_s17, %s1036_s25  ;;  %p1041_p0 = scmp.lt.u32.totalorder %s1315_s17, %s1371_s6 }
 0x239   : > { %p1042_p1 = scmp.lt.u32.totalorder %s1040_s12, %s1036_s25  ;;  %p1044_p4 = scmp.lt.u32.totalorder %s1036_s25, %s1315_s17 }
 0x23a   : > { %p1038_p12 = pnand %p1037_p11, %p1206_p3 }
 0x23b   : > { %p1043_p2 = por %p1042_p1, %p1041_p0 }
 0x23c   : > { %p1039_p13 = pneg %p1038_p12 }
 0x23d   : > { %p1045_p5 = por %p1044_p4, %p1043_p2 }
 0x23f   : > { %p1046_p6 = pnand %p1045_p5, %p1039_p13 }
 0x241   : > { %1049 = shalt.err (!%p1046_p6)
}
 0x242   : > { %924 = dma.vmem_to_hbm [thread:$0]  (%p1206_p3), %s703_s19, 16, %s1315_s17, %s687_s29  }
 0x243 PF: > { %p930_p7 = scmp.ge.s32.totalorder %s1116_s28, 2  ;;  %s720_s15 = sand.u32 1, %s1088_s21  }
 0x244   : > { %s721_s24 = scalar_lea.sflag [#allocation4], %s720_s15 }
 0x245   : > { %p927_p8 = pnand %p930_p7, %p1216_p9 }
 0x247   : > { %1083 = dma.done.wait (!%p927_p8), %s721_s24, 16  }
 0x248   : > { %1085 = vsyncadd (!%p927_p8), %s721_s24, 4294967280  ;;  %s20_s28 = sadd.s32 1, %s1116_s28   ;;  %s1379_s25 = sld [smem:[#allocation6_spill]] }
 0x249   : > { %p17_p10 = scmp.ge.s32.totalorder %s20_s28, 6   ;;  %s1380_s9 = sld [smem:[#allocation7_spill]] }
 0x24a   : > { %s1381_s27 = sld [smem:[#allocation8_spill]]  ;;  %s1382_s21 = smov %s1092_s22 }
 0x24b   : > { %s1383_s22 = smov %s1096_s23  ;;  %s1384_s23 = smov %s1224_s13 }
 0x24c   : > { %s1385_s24 = smov %s1108_s26  ;;  %19 = sbr.rel (!%p17_p10) target bundleno = 5 (0x5), region = 95 }
 0x24f   : > { %s1386_s26 = smov %s1380_s9 }
 0x253   :  { %725 = vsyncpa [#allocation4], 1 }
 0x254   :  { %727 = vsyncpa [#allocation4 + $0x1], 1 }

// kernel: _lambda_.3
= control target key start
LH: loop header
LB: loop body
LE: loop exit
PB: predicated region body
PF: predicated region fallthrough
CT: control target
= control target key end

     0   :  { %s1555_s0 = inlined_call_operand.vmem [shape: bf16[2,8,128], index: 0, kind: input, shape index: {}]   ;;  %s1556_s1 = inlined_call_operand.vmem [shape: bf16[2,1,128], index: 1, kind: input, shape index: {}]   ;;  %s1557_s2 = inlined_call_operand.vmem [shape: bf16[128,128], index: 2, kind: input, shape index: {}]   ;;  %s1558_s3 = inlined_call_operand.vmem [shape: f32[1,128], index: 3, kind: input, shape index: {}, may-alias: {3,7}]   ;;  %s1559_s4 = inlined_call_operand.vmem [shape: bf16[2,1,8], index: 4, kind: input, shape index: {}]   ;;  %s1560_s5 = inlined_call_operand.vmem [shape: f32[2,1,1], index: 5, kind: input, shape index: {}]   ;;  %s1561_s6 = inlined_call_operand.vmem [shape: bf16[128,128], index: 6, kind: input, shape index: {}]   ;;  %s1562_s7 = inlined_call_operand.vmem [shape: f32[1,128], index: 7, kind: input, shape index: {}, may-alias: {3,7}]   ;;  %s1563_s8 = inlined_call_operand.hbm [shape: f32[2,8,128], index: 8, kind: output, shape index: {0}]   ;;  %s1564_s9 = inlined_call_operand.hbm [shape: f32[2,1,128], index: 9, kind: output, shape index: {1}]  }
   0x1   :  { %1565 = sst [smem:[#allocation8_spill]] %s1555_s0 }
   0x2   :  { %15 = vsyncpa [#allocation3], 0 }
   0x3   :  { %17 = vsyncpa [#allocation3 + $0x1], 0 }
   0x4   :  { %18 = vsyncpa [#allocation5], 0 }
   0x5   :  { %20 = vsyncpa [#allocation5 + $0x1], 0  ;;  %s1312_s30 = smov 0   ;;  %s1314_s10 = smov 0  }
   0x6   :  { %s1316_s11 = smov 0   ;;  %s1318_s12 = smov 0  }
   0x7   :  { %s1320_s13 = smov 0   ;;  %s1322_s14 = smov 0  }
   0x8 LB: > { %s938_s15 = sadd.s32 4294967295, %s1255_s14   ;;  %s939_s16 = sadd.s32 4294967294, %s1255_s14   ;;  %s1255_s14 = sphi %s1322_s14, %s26_s14   ;;  %s1251_s13 = sphi %s1320_s13, %s1573_s13   ;;  %s1247_s12 = sphi %s1318_s12, %s1572_s12   ;;  %s1243_s11 = sphi %s1316_s11, %s1571_s11   ;;  %s1239_s10 = sphi %s1314_s10, %s1570_s10   ;;  %s1235_s30 = sphi %s1312_s30, %s1569_s30  }
   0x9   : > { %s38_s17 = sadd.s32 1, %s1251_s13  ;;  %s245_s18 = sadd.s32 1, %s1243_s11 }
   0xa   : > { %p40_p0 = scmp.ge.s32.totalorder %s38_s17, 2  ;;  %p255_p1 = scmp.ne.s32.totalorder %s1243_s11, %s1239_s10 }
   0xb   : > { %p256_p2 = scmp.eq.s32.totalorder %s938_s15, 1  ;;  %p261_p3 = scmp.ne.s32.totalorder %s1239_s10, %s1235_s30 }
   0xc   : > { %s1575_s17 = smov (%p40_p0, %s38_s17), 0  ;;  %p262_p5 = scmp.eq.s32.totalorder %s939_s16, 1 }
   0xd   : > { %p1352_p4 = por %p256_p2, %p255_p1  ;;  %s240_s20 = ssub.s32 %s1251_s13, %s1575_s17 }
   0xe   : > { %p944_p6 = scmp.ge.s32.totalorder %s1255_s14, 1  ;;  %p243_p7 = scmp.eq.s32.totalorder %s240_s20, 0 }
   0xf   : > { %p1359_p8 = por %p262_p5, %p261_p3  ;;  %p350_p9 = scmp.lt.s32.totalorder %s1255_s14, 3 }
  0x10   : > { %s1365_s22 = scalar_select %p243_p7, %s1243_s11, %s245_s18  }
  0x11   : > { %p351_p10 = pnand %p944_p6, %p350_p9 }
  0x12   : > { %v1129_v0 = vld [vmem:[%s1557_s2] sm:$0xff] (!%p351_p10)   ;;  %v1257_v1 = vmov (!%p351_p10), 0.0   ;;  %v1130_v2 = vld [vmem:[%s1557_s2 + $0x8] sm:$0xff] (!%p351_p10)   ;;  %p405_p11 = scmp.lt.s32.totalorder (!%p351_p10), %s1247_s12, 1  ;;  %vm1258_vm0 = vmmov (!%p351_p10), 0   ;;  %v1131_v3 = vld [vmem:[%s1557_s2 + $0x10] sm:$0xff] (!%p351_p10)   ;;  %v532_v23 = vlaneseq (!%p351_p10) }
  0x13   : > { %354 = sbr.rel (%p351_p10) target bundleno = 503 (0x1f7), region = 52  ;;  %999 = vmatprep.subr.bf16.mxu0 (!%p351_p10), %v1257_v1  ;;  %1019 = vmatprep.subr.bf16.mxu1 (!%p351_p10), %v1257_v1  ;;  %v1259_v4 = vmov (!%p351_p10), 0   ;;  %v1132_v5 = vld [vmem:[%s1557_s2 + $0x18] sm:$0xff] (!%p351_p10)   ;;  %v1133_v7 = vld [vmem:[%s1557_s2 + $0x20] sm:$0xff] (!%p351_p10)   ;;  %v1134_v8 = vld [vmem:[%s1557_s2 + $0x28] sm:$0xff] (!%p351_p10)   ;;  %s1568_s0 = sld [smem:[#allocation8_spill]] (!%p351_p10) }
  0x14   : > { %1000 = vmatpush3.bf16.msra.mxu0 (!%p351_p10), %v1129_v0  ;;  %1020 = vmatpush3.bf16.msra.mxu1 (!%p351_p10), %v1129_v0  ;;  %v1135_v9 = vld [vmem:[%s1557_s2 + $0x30] sm:$0xff] (!%p351_p10)   ;;  %v1136_v10 = vld [vmem:[%s1557_s2 + $0x38] sm:$0xff] (!%p351_p10)   ;;  %vm594_vm1 = vcmask (!%p351_p10), 1043456   ;;  %v1137_v14 = vld [vmem:[%s1561_s6] sm:$0xff] (!%p351_p10)   ;;  %vm590_vm2 = vcmask (!%p351_p10), 64512   ;;  %v533_v24 = vshrl.u32 (!%p351_p10), %v532_v23, 7 }
  0x15   : > { %1001 = vmatprep.subr.bf16.mxu0 (!%p351_p10), %v1257_v1  ;;  %1021 = vmatprep.subr.bf16.mxu1 (!%p351_p10), %v1257_v1  ;;  %v1138_v15 = vld [vmem:[%s1561_s6 + $0x8] sm:$0xff] (!%p351_p10)   ;;  %v1139_v17 = vld [vmem:[%s1561_s6 + $0x10] sm:$0xff] (!%p351_p10)   ;;  %v1140_v18 = vld [vmem:[%s1561_s6 + $0x18] sm:$0xff] (!%p351_p10)   ;;  %s1469_s27 = sand.u32 (!%p351_p10), 1, %s1239_s10  }
  0x16   : > { %1015 = vmatprep.mubr.msk.bf16.mxu0 (!%p351_p10), %vm1258_vm0, %v1257_v1  ;;  %1035 = vmatprep.mubr.msk.bf16.mxu1 (!%p351_p10), %vm1258_vm0, %v1257_v1  ;;  %v1141_v19 = vld [vmem:[%s1561_s6 + $0x20] sm:$0xff] (!%p351_p10)   ;;  %v1142_v20 = vld [vmem:[%s1561_s6 + $0x28] sm:$0xff] (!%p351_p10)   ;;  %v1143_v21 = vld [vmem:[%s1561_s6 + $0x30] sm:$0xff] (!%p351_p10)   ;;  %v534_v25 = vsub.s32 (!%p351_p10), 0, %v533_v24  ;;  %s757_s26 = scalar_lea.sflag (!%p351_p10), [#allocation3], %s1469_s27 }
  0x17   : > { %1128 = vset.pattern.permute.xlu0 (!%p351_p10), %v1259_v4  ;;  %v1144_v22 = vld [vmem:[%s1561_s6 + $0x38] sm:$0xff] (!%p351_p10)   ;;  %v955_v33 = vld [vmem:[%s1558_s3] ss:$0 sm:$0xff] (!%p351_p10) }
  0x18   : > { %1002 = vmatpush3.bf16.msra.mxu0 (!%p351_p10), %v1130_v2  ;;  %1022 = vmatpush3.bf16.msra.mxu1 (!%p351_p10), %v1130_v2 }
  0x19   : > { %1003 = vmatprep.subr.bf16.mxu0 (!%p351_p10), %v1257_v1  ;;  %1023 = vmatprep.subr.bf16.mxu1 (!%p351_p10), %v1257_v1 }
  0x1a   : > { %s1386_s29 = scalar_select %p405_p11, %s1247_s12, 1 }
  0x1c   : > { %s424_s18 = scalar_lea.vmem %s1560_s5, %s1386_s29  ;;  %1004 = vmatpush3.bf16.msra.mxu0 %v1131_v3  ;;  %1024 = vmatpush3.bf16.msra.mxu1 %v1131_v3  ;;  %s946_s16 = sshll.u32 %s1386_s29, 2 }
  0x1d   : > { %v638_v6 = vld [vmem:[%s424_s18] sm:$0x1]  ;;  %1005 = vmatprep.subr.bf16.mxu0 %v1257_v1  ;;  %1025 = vmatprep.subr.bf16.mxu1 %v1257_v1  ;;  %s411_s25 = scalar_lea.vmem %s1556_s1, %s1386_s29  ;;  %s408_s28 = scalar_lea.vmem %s1568_s0, %s946_s16 }
  0x1e   : > { %641 = vperm.xlu0 %1128, %v638_v6   ;;  %v443_v11 = vld [vmem:[%s411_s25] sm:$0x1]  ;;  %s421_s23 = scalar_lea.vmem %s1559_s4, %s1386_s29  ;;  %s945_s29 = sshll.u32 %s1469_s27, 3 }
  0x1f   : > { %v426_v12 = vld [vmem:[%s408_s28] sm:$0xf]  ;;  %s398_s18 = scalar_lea.vmem [#allocation2], %s945_s29  ;;  %s966_s16 = sshll.u32 %s1247_s12, 7 }
  0x20   : > { %1006 = vmatpush3.bf16.msra.mxu0 %v1132_v5  ;;  %1026 = vmatpush3.bf16.msra.mxu1 %v1132_v5  ;;  %v596_v13 = vsel %vm594_vm1, %v426_v12, 0  ;;  %v589_v16 = vld [vmem:[%s421_s23] sm:$0x1]  ;;  %s775_s20 = sshll.u32 %s398_s18, 4  ;;  %s1479_s25 = scalar_lea.hbm %s1563_s8, %s966_s16  ;;  %s776_s20 = int_to_ptr.vmem [resolvable:$true] %s775_s20 }
  0x21   : > { %1007 = vmatprep.subr.bf16.mxu0 %v1257_v1  ;;  %1027 = vmatprep.subr.bf16.mxu1 %v1257_v1  ;;  %s1145_s28 = scalar_lea.vmem %s776_s20, 128  ;;  %s1260_s29 = smov [#allocation2]  }
  0x22   : > { %p1146_p12 = scmp.ne.s32.totalorder %s776_s20, %s1145_s28  ;;  %s1149_s15 = sshll.u32 %s1260_s29, 4  ;;  %s1150_s15 = int_to_ptr.vmem [resolvable:$false] %s1149_s15 }
  0x23   : > { %s1151_s0 = scalar_lea.vmem %s1150_s15, 256  ;;  %p1152_p1 = scmp.lt.s32.totalorder %s776_s20, %s1150_s15 }
  0x24   : > { %1008 = vmatpush3.bf16.msra.mxu0 %v1133_v7  ;;  %1028 = vmatpush3.bf16.msra.mxu1 %v1133_v7  ;;  %p1147_p13 = pnand %p1146_p12, %p1352_p4  ;;  %p1153_p2 = scmp.lt.s32.totalorder %s1151_s0, %s1145_s28 }
  0x25   : > { %1009 = vmatprep.subr.bf16.mxu0 %v1257_v1  ;;  %1029 = vmatprep.subr.bf16.mxu1 %v1257_v1 }
  0x26   : > { %p1148_p0 = pneg %p1147_p13  ;;  %p1154_p3 = por %p1153_p2, %p1152_p1 }
  0x28   : > { %1010 = vmatpush3.bf16.msra.mxu0 %v1134_v8  ;;  %1030 = vmatpush3.bf16.msra.mxu1 %v1134_v8  ;;  %p1155_p5 = pnand %p1154_p3, %p1148_p0 }
  0x29   : > { %1011 = vmatprep.subr.bf16.mxu0 %v1257_v1  ;;  %1031 = vmatprep.subr.bf16.mxu1 %v1257_v1 }
  0x2c   : > { %1012 = vmatpush3.bf16.msra.mxu0 %v1135_v9  ;;  %1032 = vmatpush3.bf16.msra.mxu1 %v1135_v9 }
  0x2d   : > { %1013 = vmatprep.subr.bf16.mxu0 %v1257_v1  ;;  %1033 = vmatprep.subr.bf16.mxu1 %v1257_v1 }
  0x30   : > { %1014 = vmatpush3.bf16.msra.mxu0 %v1136_v10  ;;  %1034 = vmatpush3.bf16.msra.mxu1 %v1136_v10 }
  0x31   : > { %1039 = vmatprep.subr.bf16.mxu0 %v1257_v1  ;;  %1045 = vmatprep.subr.bf16.mxu1 %v1257_v1 }
  0x33   : > { %1016 = vmatmul.mubr.bf16.vlgmr.msra.gmra.mrb[0].mxu0 %v443_v11  ;;  %1036 = vmatmul.mubr.bf16.vlgmr.msra.gmra.mrb[0].mxu1 %v426_v12 }
  0x34   : > { %1040 = vmatpush3.bf16.msra.mxu0 %v596_v13  ;;  %1041 = vmatprep.mubr.msk.bf16.mxu0 %vm1258_vm0, %v1257_v1 }
  0x35   : > { %1046 = vmatpush3.bf16.msra.mxu1 %v1137_v14  ;;  %1061 = vmatprep.mubr.msk.bf16.mxu1 %vm1258_vm0, %v1257_v1 }
  0x36   : > { %1047 = vmatprep.subr.bf16.mxu1 %v1257_v1 }
  0x39   : > { %1048 = vmatpush3.bf16.msra.mxu1 %v1138_v15 }
  0x3a   : > { %1049 = vmatprep.subr.bf16.mxu1 %v1257_v1 }
  0x3b   : > { %1042 = vmatmul.mubr.msk.bf16.vlgmr.msra.gmra.mrb[4].mxu0 %vm590_vm2, %v589_v16 }
  0x3d   : > { %1050 = vmatpush3.bf16.msra.mxu1 %v1139_v17 }
  0x3e   : > { %1051 = vmatprep.subr.bf16.mxu1 %v1257_v1 }
  0x41   : > { %1052 = vmatpush3.bf16.msra.mxu1 %v1140_v18 }
  0x42   : > { %1053 = vmatprep.subr.bf16.mxu1 %v1257_v1 }
  0x45   : > { %1054 = vmatpush3.bf16.msra.mxu1 %v1141_v19 }
  0x46   : > { %1055 = vmatprep.subr.bf16.mxu1 %v1257_v1 }
  0x49   : > { %1056 = vmatpush3.bf16.msra.mxu1 %v1142_v20 }
  0x4a   : > { %1057 = vmatprep.subr.bf16.mxu1 %v1257_v1 }
  0x4d   : > { %1058 = vmatpush3.bf16.msra.mxu1 %v1143_v21 }
  0x4e   : > { %1059 = vmatprep.subr.bf16.mxu1 %v1257_v1 }
  0x51   : > { %1060 = vmatpush3.bf16.msra.mxu1 %v1144_v22 }
  0x9d   : > { %v642_v26 = vpop.permute.xlu0 %641 }
  0x9e   : > { %v647_v39 = vrot.slane %v642_v26, %v534_v25 }
 0x106   : > { %v526_v27 = vpop.f32.mrb[0].mxu0  ;;  %v570_v28 = vpop.f32.mrb[0].mxu1 }
 0x107   : > { %v535_v29 = vrot.slane %v526_v27, %v534_v25  ;;  %v1017_v30 = vpop.f32.mrb[1].mxu0  ;;  %v1037_v31 = vpop.f32.mrb[1].mxu1 }
 0x108   : > { %v529_v32 = vpop.f32.mrb[2].mxu0  ;;  %v573_v34 = vpop.f32.mrb[2].mxu1 }
 0x109   : > { %v1018_v35 = vpop.f32.mrb[3].mxu0  ;;  %v571_v36 = vadd.f32 %v570_v28, %v535_v29  ;;  %v1038_v37 = vpop.f32.mrb[3].mxu1 }
 0x10b   : > { %v583_v38 = vadd.f32 %v955_v33, %v571_v36 }
 0x10d   : > { %584 = vst [vmem:[%s398_s18] sm:$0xff] %v583_v38 }
 0x10e   : > { %v632_v40 = vpop.f32.mrb[4].mxu0 }
 0x10f   : > { %v648_v41 = vmul.f32 %v647_v39, %v632_v40  ;;  %v1043_v42 = vpop.f32.mrb[5].mxu0 }
 0x110   : > { %v635_v43 = vpop.f32.mrb[6].mxu0 }
 0x111   : > { %v649_v44 = vpack.c.bf16 %v648_v41, %v648_v41  ;;  %v1044_v45 = vpop.f32.mrb[7].mxu0 }
 0x113   : > { %1062 = vmatmul.mubr.bf16.vlgmr.msra.gmra.mrb[4].mxu1 %v649_v44 }
 0x114   : > { %1158 = shalt.err (!%p1155_p5)
}
 0x115   : > { %s1159_s18 = scalar_lea.hbm %s1479_s25, 128  ;;  %s1163_s24 = scalar_lea.hbm %s1563_s8, 256 }
 0x116   : > { %p1160_p6 = scmp.ne.s32.totalorder %s1479_s25, %s1159_s18  ;;  %p1164_p10 = scmp.lt.u32.totalorder %s1479_s25, %s1563_s8 }
 0x117   : > { %p1165_p11 = scmp.lt.u32.totalorder %s1163_s24, %s1159_s18  ;;  %p1167_p13 = scmp.lt.u32.totalorder %s1159_s18, %s1479_s25 }
 0x118   : > { %p1161_p7 = pnand %p1160_p6, %p1352_p4 }
 0x119   : > { %p1166_p12 = por %p1165_p11, %p1164_p10 }
 0x11a   : > { %p1162_p9 = pneg %p1161_p7 }
 0x11b   : > { %p1168_p0 = por %p1167_p13, %p1166_p12 }
 0x11d   : > { %p1169_p1 = pnand %p1168_p0, %p1162_p9 }
 0x11f   : > { %1172 = shalt.err (!%p1169_p1)
}
 0x120   : > { %1065 = dma.vmem_to_hbm [thread:$0]  (%p1352_p4), %s776_s20, 128, %s1479_s25, %s757_s26   ;;  %v666_v46 = vld [vmem:[%s1562_s7] sm:$0x1] }
 0x121   : > { %s967_s16 = sshll.u32 %s1247_s12, 4  ;;  %s404_s23 = scalar_lea.vmem [#allocation4], %s1469_s27 }
 0x122   : > { %s788_s24 = sshll.u32 %s404_s23, 4  ;;  %s1507_s15 = scalar_lea.hbm %s1564_s9, %s967_s16  ;;  %s1509_s24 = int_to_ptr.vmem [resolvable:$true] %s788_s24 }
 0x123   : > { %s762_s20 = scalar_lea.sflag [#allocation5], %s1469_s27  ;;  %s1173_s12 = scalar_lea.vmem %s1509_s24, 16 }
 0x124   : > { %p1174_p2 = scmp.ne.s32.totalorder %s1509_s24, %s1173_s12  ;;  %s1261_s25 = smov [#allocation4]  }
 0x125   : > { %s1177_s26 = sshll.u32 %s1261_s25, 4  ;;  %s1178_s26 = int_to_ptr.vmem [resolvable:$false] %s1177_s26 }
 0x126   : > { %p1175_p3 = pnand %p1174_p2, %p1352_p4  ;;  %s1179_s0 = scalar_lea.vmem %s1178_s26, 32 }
 0x127   : > { %p1180_p6 = scmp.lt.s32.totalorder %s1509_s24, %s1178_s26  ;;  %p1181_p7 = scmp.lt.s32.totalorder %s1179_s0, %s1173_s12 }
 0x128   : > { %p1176_p5 = pneg %p1175_p3 }
 0x129   : > { %p1182_p9 = por %p1181_p7, %p1180_p6 }
 0x12b   : > { %p1183_p10 = pnand %p1182_p9, %p1176_p5 }
 0x1e6   : > { %v749_v47 = vpop.f32.mrb[4].mxu1 }
 0x1e7   : > { %v750_v48 = vadd.f32 %v749_v47, %v666_v46  ;;  %v1063_v49 = vpop.f32.mrb[5].mxu1 }
 0x1e8   : > { %v752_v50 = vpop.f32.mrb[6].mxu1 }
 0x1e9   : > { %755 = vst [vmem:[%s404_s23] sm:$0x1] %v750_v48  ;;  %v1064_v51 = vpop.f32.mrb[7].mxu1 }
 0x1ea   : > { %1186 = shalt.err (!%p1183_p10)
}
 0x1eb   : > { %s1187_s27 = scalar_lea.hbm %s1507_s15, 16  ;;  %s1191_s23 = scalar_lea.hbm %s1564_s9, 32 }
 0x1ec   : > { %p1188_p11 = scmp.ne.s32.totalorder %s1507_s15, %s1187_s27  ;;  %p1192_p0 = scmp.lt.u32.totalorder %s1507_s15, %s1564_s9 }
 0x1ed   : > { %p1193_p1 = scmp.lt.u32.totalorder %s1191_s23, %s1187_s27  ;;  %p1195_p3 = scmp.lt.u32.totalorder %s1187_s27, %s1507_s15 }
 0x1ee   : > { %p1189_p12 = pnand %p1188_p11, %p1352_p4 }
 0x1ef   : > { %p1194_p2 = por %p1193_p1, %p1192_p0 }
 0x1f0   : > { %p1190_p13 = pneg %p1189_p12 }
 0x1f1   : > { %p1196_p5 = por %p1195_p3, %p1194_p2 }
 0x1f3   : > { %p1197_p6 = pnand %p1196_p5, %p1190_p13 }
 0x1f5   : > { %1200 = shalt.err (!%p1197_p6)
}
 0x1f6   : > { %1066 = dma.vmem_to_hbm [thread:$0]  (%p1352_p4), %s1509_s24, 16, %s1507_s15, %s762_s20  }
 0x1f7 PF: > { %p1076_p7 = scmp.ge.s32.totalorder %s1255_s14, 2  ;;  %s800_s12 = sand.u32 1, %s1235_s30  }
 0x1f8   : > { %s801_s25 = scalar_lea.sflag [#allocation3], %s800_s12 }
 0x1f9   : > { %p1070_p9 = pnand %p1076_p7, %p1359_p8 }
 0x1fb   : > { %1226 = dma.done.wait (!%p1070_p9), %s801_s25, 128  }
 0x1fc   : > { %1228 = vsyncadd (!%p1070_p9), %s801_s25, 4294967168  ;;  %s810_s26 = scalar_lea.sflag [#allocation5], %s800_s12 }
 0x1fd   : > { %1230 = dma.done.wait (!%p1070_p9), %s810_s26, 16  }
 0x1fe   : > { %1232 = vsyncadd (!%p1070_p9), %s810_s26, 4294967280  ;;  %s26_s14 = sadd.s32 1, %s1255_s14   ;;  %s1569_s30 = smov %s1239_s10 }
 0x1ff   : > { %p23_p10 = scmp.ge.s32.totalorder %s26_s14, 4   ;;  %s1570_s10 = smov %s1243_s11 }
 0x200   : > { %s1571_s11 = smov %s1365_s22  ;;  %s1572_s12 = smov %s1251_s13 }
 0x201   : > { %s1573_s13 = smov %s1575_s17  ;;  %25 = sbr.rel (!%p23_p10) target bundleno = 8 (0x8), region = 123 }
 0x208   :  { %814 = vsyncpa [#allocation3], 1 }
 0x209   :  { %816 = vsyncpa [#allocation3 + $0x1], 1 }
 0x20a   :  { %817 = vsyncpa [#allocation5], 1 }
 0x20b   :  { %819 = vsyncpa [#allocation5 + $0x1], 1 }

</bundles_post_ra>
